<compile_context>
chip_gen: v6e
topology: v6e:2x2x1
jax: 0.10.0
libtpu: 0.0.40
codegen_flags: <defaults>
</compile_context>

<pallas_src>
import jax
import jax.numpy as jnp
from jax.experimental import pallas as pl
from jax.experimental.pallas import tpu as pltpu


def _round_up(x, m):
    return ((x + m - 1) // m) * m


def _fused_head_kernel(x_ref, w_ref, b_ref, o_ref, acc_ref):
    # x_ref  : (N, C_pad, hw_tile)  one head, one HW chunk (head dim squeezed)
    # w_ref  : (C_pad, M_pad)       per-head W^T, pre-scaled by 1/(H*W)
    # b_ref  : (1, M_pad)           per-head bias
    # o_ref  : (N, M_pad)           per-head logits (lane-dense)
    # acc_ref: (N, C_pad, 128) f32  running lane-group partial sums
    k = pl.program_id(1)

    @pl.when(k == 0)
    def _init():
        acc_ref[...] = jnp.zeros_like(acc_ref)

    # Element-wise VPU accumulation of 128-lane groups: no cross-lane reduce
    # on the big tensor; per-group cast avoids a full-tile f32 materialization.
    hw_tile = x_ref.shape[-1]
    num_groups = hw_tile // 128
    partial = x_ref[:, :, 0:128].astype(jnp.float32)
    for g in range(1, num_groups):
        partial = partial + x_ref[:, :, g * 128:(g + 1) * 128].astype(jnp.float32)
    acc_ref[...] += partial

    @pl.when(k == pl.num_programs(1) - 1)
    def _finalize():
        # Single cross-lane reduce on the small accumulator, then the tiny
        # (N, C_pad) @ (C_pad, M_pad) MXU matmul + bias, stored once.
        pooled = jnp.sum(acc_ref[...], axis=-1)                    # (N, C_pad)
        w = w_ref[...].astype(jnp.float32)
        b = b_ref[...].astype(jnp.float32)
        logits = jnp.dot(pooled, w, preferred_element_type=jnp.float32) + b
        o_ref[...] = logits.astype(o_ref.dtype)


def simple_head(features, weights, biases, hw_tile_max=1024):
    """features: list of (N, C_i, H_i, W_i); weights[i]: (M, C_i); biases[i]: (M,).
    Returns list of (N, M) logits, matching SimpleHead.forward."""
    num_heads = len(features)
    N = features[0].shape[0]
    n_classes = weights[0].shape[0]
    dtype = features[0].dtype

    c_list = [f.shape[1] for f in features]
    hw_list = [f.shape[2] * f.shape[3] for f in features]

    C_pad = _round_up(max(c_list), 8)
    M_pad = _round_up(n_classes, 128)
    hw_max = max(hw_list)

    # Tile the HW (lane) axis: multiple of 128, capped by a ~2 MiB/buffer
    # VMEM budget so double-buffering fits every generation's scoped default.
    hw_tile_max = max(128, (hw_tile_max // 128) * 128)
    budget = 2 * 1024 * 1024
    cap = max(128, (budget // (N * C_pad * dtype.itemsize)) // 128 * 128)
    hw_tile = min(_round_up(hw_max, 128), hw_tile_max, cap)
    HW_pad = _round_up(hw_max, hw_tile)
    num_k = HW_pad // hw_tile

    # Stack / zero-pad inputs.  Fold 1/(H*W) into the transposed weights so
    # the kernel only ever sums over the spatial axis.
    x_stack = jnp.zeros((num_heads, N, C_pad, HW_pad), dtype)
    w_stack = jnp.zeros((num_heads, C_pad, M_pad), jnp.float32)
    b_stack = jnp.zeros((num_heads, 1, M_pad), jnp.float32)
    for h, (f, w, b) in enumerate(zip(features, weights, biases)):
        c, hw = c_list[h], hw_list[h]
        x_stack = x_stack.at[h, :, :c, :hw].set(f.reshape(N, c, hw).astype(dtype))
        w_stack = w_stack.at[h, :c, :n_classes].set(w.T.astype(jnp.float32) / float(hw))
        b_stack = b_stack.at[h, 0, :n_classes].set(b.astype(jnp.float32))

    out = pl.pallas_call(
        _fused_head_kernel,
        out_shape=jax.ShapeDtypeStruct((num_heads, N, M_pad), jnp.float32),
        grid_spec=pltpu.PrefetchScalarGridSpec(
            num_scalar_prefetch=0,
            grid=(num_heads, num_k),
            in_specs=[
                pl.BlockSpec((None, N, C_pad, hw_tile), lambda h, k: (h, 0, 0, k)),
                pl.BlockSpec((None, C_pad, M_pad), lambda h, k: (h, 0, 0)),
                pl.BlockSpec((None, 1, M_pad), lambda h, k: (h, 0, 0)),
            ],
            out_specs=pl.BlockSpec((None, N, M_pad), lambda h, k: (h, 0, 0)),
            scratch_shapes=[pltpu.VMEM((N, C_pad, 128), jnp.float32)],
        ),
        compiler_params=pltpu.CompilerParams(
            dimension_semantics=("parallel", "arbitrary"),
        ),
    )(x_stack, w_stack, b_stack)

    return [out[h, :, :n_classes] for h in range(num_heads)]


def _init_linear_params(key, in_features, out_features):
    # Deterministic init mirroring nn.Linear's uniform(-1/sqrt(in), 1/sqrt(in)).
    kw, kb = jax.random.split(key)
    bound = 1.0 / (in_features ** 0.5)
    weight = jax.random.uniform(kw, (out_features, in_features),
                                jnp.float32, -bound, bound)
    bias = jax.random.uniform(kb, (out_features,), jnp.float32, -bound, bound)
    return weight, bias


if __name__ == "__main__":
    key = jax.random.PRNGKey(0)
    n_classes = 1
    input_shapes = [4, 8]                    # channel counts of the two feature maps

    k1, k2, k3, k4 = jax.random.split(key, 4)
    features = [
        jax.random.normal(k1, (2, 4, 16, 16), jnp.float32),
        jax.random.normal(k2, (2, 8, 8, 8), jnp.float32),
    ]

    weights, biases = [], []
    for c, kk in zip(input_shapes, [k3, k4]):
        w, b = _init_linear_params(kk, c, n_classes)
        weights.append(w)
        biases.append(b)

    # Pure-JAX reference (same semantics as the PyTorch module).
    refs = [f.mean(axis=(2, 3)) @ w.T + b
            for f, w, b in zip(features, weights, biases)]

    # Run with the auto-sized tile and with a forced 128-wide tile so the
    # multi-step HW reduction path is exercised as well.
    for tile_cap in (1024, 128):
        logits = simple_head(features, weights, biases, hw_tile_max=tile_cap)
        for lg in logits:
            jax.block_until_ready(lg)
        for lg, ref in zip(logits, refs):
            assert lg.shape == ref.shape
            assert jnp.allclose(lg, ref, atol=1e-5, rtol=1e-5)

    print("KERNEL_OK")
</pallas_src>

<mosaic_0001>
module attributes {stable_mosaic.version = 11 : i64} {
  func.func @_fused_head_kernel(%arg0: i32, %arg1: i32, %arg2: memref<1x2x8x256xf32, #tpu.memory_space<vmem>>, %arg3: memref<1x8x128xf32, #tpu.memory_space<vmem>>, %arg4: memref<1x1x128xf32, #tpu.memory_space<vmem>>, %arg5: memref<1x2x128xf32, #tpu.memory_space<vmem>>, %arg6: memref<2x8x128xf32, #tpu.memory_space<vmem>>) attributes {dimension_semantics = [#tpu.dimension_semantics<parallel>, #tpu.dimension_semantics<arbitrary>], iteration_bounds = array<i64: 2, 1>, scalar_prefetch = 0 : i64, scratch_operands = 1 : i64, tpu.core_type = #tpu.core_type<tc>, window_params = [{transform_indices = @transform_0, window_bounds = array<i64: 1, 2, 8, 256>}, {transform_indices = @transform_1, window_bounds = array<i64: 1, 8, 128>}, {transform_indices = @transform_2, window_bounds = array<i64: 1, 1, 128>}, {transform_indices = @transform_3, window_bounds = array<i64: 1, 2, 128>}]} {
    %c0_i32 = arith.constant 0 : i32
    %0 = arith.cmpi eq, %arg1, %c0_i32 : i32
    %1 = arith.extui %0 : i1 to i32
    %c0_i32_0 = arith.constant 0 : i32
    %2 = arith.cmpi ne, %1, %c0_i32_0 : i32
    scf.if %2 {
      %cst = arith.constant 0.000000e+00 : f32
      %14 = vector.broadcast %cst : f32 to vector<2x8x128xf32>
      %c0_15 = arith.constant 0 : index
      %c0_16 = arith.constant 0 : index
      %c0_17 = arith.constant 0 : index
      %15 = vector.load %arg6[%c0_15, %c0_16, %c0_17] : memref<2x8x128xf32, #tpu.memory_space<vmem>>, vector<2x8x128xf32>
      tpu.vector_store %arg6[%c0_15, %c0_16, %c0_17], %14 {strides = array<i32>} : memref<2x8x128xf32, #tpu.memory_space<vmem>>, vector<2x8x128xf32>,
    } else {
    }
    %c0 = arith.constant 0 : index
    %c0_1 = arith.constant 0 : index
    %c0_2 = arith.constant 0 : index
    %c0_3 = arith.constant 0 : index
    %3 = vector.load %arg2[%c0, %c0_1, %c0_2, %c0_3] : memref<1x2x8x256xf32, #tpu.memory_space<vmem>>, vector<1x2x8x128xf32>
    %4 = vector.shape_cast %3 : vector<1x2x8x128xf32> to vector<2x8x128xf32>
    %c0_4 = arith.constant 0 : index
    %c0_5 = arith.constant 0 : index
    %c0_6 = arith.constant 0 : index
    %c128 = arith.constant 128 : index
    %5 = vector.load %arg2[%c0_4, %c0_5, %c0_6, %c128] : memref<1x2x8x256xf32, #tpu.memory_space<vmem>>, vector<1x2x8x128xf32>
    %6 = vector.shape_cast %5 : vector<1x2x8x128xf32> to vector<2x8x128xf32>
    %7 = arith.addf %4, %6 : vector<2x8x128xf32>
    %c0_7 = arith.constant 0 : index
    %c0_8 = arith.constant 0 : index
    %c0_9 = arith.constant 0 : index
    %8 = vector.load %arg6[%c0_7, %c0_8, %c0_9] : memref<2x8x128xf32, #tpu.memory_space<vmem>>, vector<2x8x128xf32>
    %9 = arith.addf %8, %7 : vector<2x8x128xf32>
    %c0_10 = arith.constant 0 : index
    %c0_11 = arith.constant 0 : index
    %c0_12 = arith.constant 0 : index
    %10 = vector.load %arg6[%c0_10, %c0_11, %c0_12] : memref<2x8x128xf32, #tpu.memory_space<vmem>>, vector<2x8x128xf32>
    tpu.vector_store %arg6[%c0_10, %c0_11, %c0_12], %9 {strides = array<i32>} : memref<2x8x128xf32, #tpu.memory_space<vmem>>, vector<2x8x128xf32>,
    %c0_i32_13 = arith.constant 0 : i32
    %11 = arith.cmpi eq, %arg1, %c0_i32_13 : i32
    %12 = arith.extui %11 : i1 to i32
    %c0_i32_14 = arith.constant 0 : i32
    %13 = arith.cmpi ne, %12, %c0_i32_14 : i32
    scf.if %13 {
      %c0_15 = arith.constant 0 : index
      %c0_16 = arith.constant 0 : index
      %c0_17 = arith.constant 0 : index
      %14 = vector.load %arg6[%c0_15, %c0_16, %c0_17] : memref<2x8x128xf32, #tpu.memory_space<vmem>>, vector<2x8x128xf32>
      %cst = arith.constant dense<0.000000e+00> : vector<2x8xf32>
      %15 = vector.multi_reduction <add>, %14, %cst [2] : vector<2x8x128xf32> to vector<2x8xf32>
      %c0_18 = arith.constant 0 : index
      %c0_19 = arith.constant 0 : index
      %c0_20 = arith.constant 0 : index
      %16 = vector.load %arg3[%c0_18, %c0_19, %c0_20] : memref<1x8x128xf32, #tpu.memory_space<vmem>>, vector<1x8x128xf32>
      %17 = vector.shape_cast %16 : vector<1x8x128xf32> to vector<8x128xf32>
      %c0_21 = arith.constant 0 : index
      %c0_22 = arith.constant 0 : index
      %c0_23 = arith.constant 0 : index
      %18 = vector.load %arg4[%c0_21, %c0_22, %c0_23] : memref<1x1x128xf32, #tpu.memory_space<vmem>>, vector<1x1x128xf32>
      %19 = vector.shape_cast %18 : vector<1x1x128xf32> to vector<1x128xf32>
      %cst_24 = arith.constant dense<0.000000e+00> : vector<2x128xf32>
      %20 = tpu.matmul %15, %17, %cst_24 {dimension_numbers = #tpu.dot_dimension_numbers<[1], [0], [0], [1], [0, 0, 1, 1], [], []>} : vector<2x8xf32>, vector<8x128xf32>, vector<2x128xf32> -> vector<2x128xf32>
      %21 = vector.broadcast %19 : vector<1x128xf32> to vector<2x128xf32>
      %22 = arith.addf %20, %21 : vector<2x128xf32>
      %c0_25 = arith.constant 0 : index
      %c0_26 = arith.constant 0 : index
      %c0_27 = arith.constant 0 : index
      %23 = vector.load %arg5[%c0_25, %c0_26, %c0_27] : memref<1x2x128xf32, #tpu.memory_space<vmem>>, vector<1x2x128xf32>
      %24 = vector.shape_cast %23 : vector<1x2x128xf32> to vector<2x128xf32>
      %25 = vector.shape_cast %22 : vector<2x128xf32> to vector<1x2x128xf32>
      tpu.vector_store %arg5[%c0_25, %c0_26, %c0_27], %25 {strides = array<i32>} : memref<1x2x128xf32, #tpu.memory_space<vmem>>, vector<1x2x128xf32>,
    } else {
    }
    return
  }
  func.func @transform_0(%arg0: i32, %arg1: i32) -> (i32, i32, i32, i32) {
    %c0_i32 = arith.constant 0 : i32
    %c0_i32_0 = arith.constant 0 : i32
    %c0_i32_1 = arith.constant 0 : i32
    return %arg0, %c0_i32, %c0_i32_0, %arg1 : i32, i32, i32, i32
  }
  func.func @transform_1(%arg0: i32, %arg1: i32) -> (i32, i32, i32) {
    %c0_i32 = arith.constant 0 : i32
    %c0_i32_0 = arith.constant 0 : i32
    %c0_i32_1 = arith.constant 0 : i32
    return %arg0, %c0_i32, %c0_i32_0 : i32, i32, i32
  }
  func.func @transform_2(%arg0: i32, %arg1: i32) -> (i32, i32, i32) {
    %c0_i32 = arith.constant 0 : i32
    %c0_i32_0 = arith.constant 0 : i32
    %c0_i32_1 = arith.constant 0 : i32
    return %arg0, %c0_i32, %c0_i32_0 : i32, i32, i32
  }
  func.func @transform_3(%arg0: i32, %arg1: i32) -> (i32, i32, i32) {
    %c0_i32 = arith.constant 0 : i32
    %c0_i32_0 = arith.constant 0 : i32
    %c0_i32_1 = arith.constant 0 : i32
    return %arg0, %c0_i32, %c0_i32_0 : i32, i32, i32
  }
}

</mosaic_0001>

<bundles_post_ra>
// kernel: tpu_custom_call.1
= control target key start
LH: loop header
LB: loop body
LE: loop exit
PB: predicated region body
PF: predicated region fallthrough
CT: control target
= control target key end

     0   :  { %s948_s0 = inlined_call_operand.hbm [shape: f32[2,2,8,256], index: 0, kind: input, shape index: {}]   ;;  %s949_s1 = inlined_call_operand.hbm [shape: f32[2,8,128], index: 1, kind: input, shape index: {}]   ;;  %s950_s2 = inlined_call_operand.vmem [shape: f32[2,1,128], index: 2, kind: input, shape index: {}]   ;;  %s951_s3 = inlined_call_operand.hbm [shape: f32[2,2,128], index: 3, kind: output, shape index: {}]  }
   0x1   :  { %952 = sst [smem:[#allocation12_spill]] %s948_s0 }
   0x2   :  { %8 = vsyncpa [#allocation4], 0 }
   0x3   :  { %10 = vsyncpa [#allocation4 + $0x1], 0 }
   0x4   :  { %11 = vsyncpa [#allocation7], 0 }
   0x5   :  { %13 = vsyncpa [#allocation7 + $0x1], 0 }
   0x6   :  { %14 = vsyncpa [#allocation5], 0 }
   0x7   :  { %16 = vsyncpa [#allocation5 + $0x1], 0  ;;  %s774_s12 = smov 0   ;;  %s776_s13 = smov 0  }
   0x8   :  { %s778_s14 = smov 0   ;;  %s780_s15 = smov 0  }
   0x9   :  { %s782_s16 = smov 0   ;;  %s784_s17 = smov 0  }
   0xa LB: > { %s507_s18 = sadd.s32 4294967295, %s745_s17   ;;  %s508_s19 = sadd.s32 4294967294, %s745_s17   ;;  %s745_s17 = sphi %s784_s17, %s22_s17   ;;  %s741_s16 = sphi %s782_s16, %s964_s16   ;;  %s737_s15 = sphi %s780_s15, %s963_s15   ;;  %s733_s14 = sphi %s778_s14, %s962_s14   ;;  %s729_s13 = sphi %s776_s13, %s961_s13   ;;  %s725_s12 = sphi %s774_s12, %s960_s12  }
   0xb   : > { %s34_s20 = sadd.s32 1, %s741_s16  ;;  %s43_s21 = sadd.s32 1, %s733_s14 }
   0xc   : > { %p36_p0 = scmp.ge.s32.totalorder %s34_s20, 2  ;;  %p50_p1 = scmp.ne.s32.totalorder %s733_s14, %s729_s13 }
   0xd   : > { %p51_p2 = scmp.eq.s32.totalorder %s745_s17, 0  ;;  %p56_p3 = scmp.ne.s32.totalorder %s729_s13, %s725_s12 }
   0xe   : > { %s966_s20 = smov (%p36_p0, %s34_s20), 0  ;;  %p57_p5 = scmp.eq.s32.totalorder %s507_s18, 0 }
   0xf   : > { %p815_p4 = por %p51_p2, %p50_p1  ;;  %s38_s23 = ssub.s32 %s741_s16, %s966_s20 }
  0x10   : > { %p132_p6 = scmp.eq.s32.totalorder %s507_s18, 1  ;;  %p41_p7 = scmp.eq.s32.totalorder %s38_s23, 0 }
  0x11   : > { %p821_p8 = por %p57_p5, %p56_p3  ;;  %p138_p10 = scmp.eq.s32.totalorder %s508_s19, 1 }
  0x12   : > { %p825_p9 = por %p132_p6, %p50_p1  ;;  %p510_p12 = scmp.ge.s32.totalorder %s745_s17, 2 }
  0x13   : > { %s830_s26 = scalar_select %p41_p7, %s733_s14, %s43_s21  }
  0x14   : > { %p832_p11 = por %p138_p10, %p56_p3  ;;  %p551_p13 = scmp.lt.s32.totalorder %s745_s17, 2 }
  0x15   : > { %s839_s28 = sand.u32 1, %s733_s14   ;;  %s526_s30 = sshll.u32 %s741_s16, 9 }
  0x16   : > { %s511_s29 = sshll.u32 %s839_s28, 5  ;;  %s957_s0 = sld [smem:[#allocation12_spill]] }
  0x17   : > { %s162_s7 = scalar_lea.vmem [#allocation3], %s511_s29  ;;  %p848_p0 = pnand %p551_p13, %p815_p4 }
  0x18   : > { %s171_s8 = sshll.u32 %s162_s7, 4  ;;  %p516_p1 = scmp.ge.s32.totalorder %s745_s17, 1  ;;  %s172_s8 = int_to_ptr.vmem [resolvable:$true] %s171_s8 }
  0x19   : > { %s159_s10 = scalar_lea.sflag [#allocation4], %s839_s28  ;;  %p607_p2 = pneg %p848_p0 }
  0x1a   : > { %s618_s11 = scalar_lea.vmem %s172_s8, 512  ;;  %s747_s18 = smov [#allocation3]  }
  0x1b   : > { %p619_p3 = scmp.ne.s32.totalorder %s172_s8, %s618_s11  ;;  %s623_s19 = sshll.u32 %s747_s18, 4  ;;  %s624_s19 = int_to_ptr.vmem [resolvable:$false] %s623_s19 }
  0x1c   : > { %s170_s6 = scalar_lea.hbm %s957_s0, %s526_s30  ;;  %s625_s21 = scalar_lea.vmem %s624_s19, 1024 }
  0x1d   : > { %p621_p5 = pnand %p619_p3, %p607_p2  ;;  %p626_p4 = scmp.lt.s32.totalorder %s172_s8, %s624_s19 }
  0x1e   : > { %p627_p7 = scmp.lt.s32.totalorder %s625_s21, %s618_s11 }
  0x1f   : > { %p622_p6 = pneg %p621_p5 }
  0x20   : > { %p628_p10 = por %p627_p7, %p626_p4 }
  0x22   : > { %p629_p13 = pnand %p628_p10, %p622_p6 }
  0x24   : > { %632 = shalt.err (!%p629_p13)
}
  0x25   : > { %s748_s22 = smov 256   ;;  %s749_s23 = smov 16  }
  0x26   : > { %543 = dma.hbm_to_vmem [thread:$0]  (!%p848_p0), %s170_s6, 512, %s172_s8, %s159_s10, %s748_s22, %s748_s22, %s749_s23  }
  0x27   : > { %p203_p3 = scmp.lt.s32.totalorder %s745_s17, 3  ;;  %s514_s29 = sshll.u32 %s839_s28, 3 }
  0x28   : > { %s515_s30 = sshll.u32 %s741_s16, 7  ;;  %s185_s18 = scalar_lea.vmem [#allocation6], %s514_s29 }
  0x29   : > { %p866_p5 = pnand %p516_p1, %p203_p3  ;;  %s190_s11 = scalar_lea.hbm %s949_s1, %s515_s30 }
  0x2a   : > { %s192_s19 = sshll.u32 %s185_s18, 4  ;;  %s182_s21 = scalar_lea.sflag [#allocation7], %s839_s28  ;;  %s193_s19 = int_to_ptr.vmem [resolvable:$true] %s192_s19 }
  0x2b   : > { %s646_s0 = scalar_lea.vmem %s193_s19, 128  ;;  %s750_s6 = smov [#allocation6]  }
  0x2c   : > { %p647_p6 = scmp.ne.s32.totalorder %s193_s19, %s646_s0  ;;  %s651_s8 = sshll.u32 %s750_s6, 4  ;;  %s652_s8 = int_to_ptr.vmem [resolvable:$false] %s651_s8 }
  0x2d   : > { %s653_s10 = scalar_lea.vmem %s652_s8, 256  ;;  %p654_p1 = scmp.lt.s32.totalorder %s193_s19, %s652_s8 }
  0x2e   : > { %p649_p4 = pnand %p647_p6, %p607_p2  ;;  %p655_p10 = scmp.lt.s32.totalorder %s653_s10, %s646_s0 }
  0x30   : > { %p650_p7 = pneg %p649_p4  ;;  %p656_p13 = por %p655_p10, %p654_p1 }
  0x32   : > { %p657_p3 = pnand %p656_p13, %p650_p7 }
  0x34   : > { %660 = shalt.err (!%p657_p3)
}
  0x35   : > { %546 = dma.hbm_to_vmem [thread:$0]  (!%p848_p0), %s190_s11, 128, %s193_s19, %s182_s21  }
  0x36   : > { %207 = sbr.rel (%p866_p5) target bundleno = 419 (0x1a3), region = 32  ;;  %s882_s28 = sand.u32 (!%p866_p5), 1, %s729_s13  }
  0x37   : > { %s517_s22 = sshll.u32 (!%p866_p5), %s882_s28, 5  ;;  %s210_s23 = scalar_lea.sflag (!%p866_p5), [#allocation4], %s882_s28 }
  0x38   : > { %s213_s29 = scalar_lea.vmem (!%p866_p5), [#allocation3], %s517_s22 }
  0x3b   : > { %712 = dma.done.wait (%p821_p8), %s210_s23, 512  }
  0x3c   : > { %714 = vsyncadd (%p821_p8), %s210_s23, 4294966784  ;;  %s518_s0 = sshll.u32 %s882_s28, 3  ;;  %s219_s9 = scalar_lea.sflag [#allocation7], %s882_s28 }
  0x3d   : > { %s222_s30 = scalar_lea.vmem [#allocation6], %s518_s0 }
  0x3e   : > { %716 = dma.done.wait (%p821_p8), %s219_s9, 128  }
  0x3f   : > { %718 = vsyncadd (%p821_p8), %s219_s9, 4294967168  ;;  %v263_v0 = vld [vmem:[%s213_s29] sm:$0xff]  ;;  %v265_v1 = vld [vmem:[%s213_s29 + $0x8] sm:$0xff]  ;;  %v751_v7 = vmov 0.0   ;;  %vm752_vm0 = vmmov 0   ;;  %v294_v8 = vlaneseq  ;;  %vm304_vm1 = vcmask 1041409  }
  0x40   : > { %v264_v2 = vld [vmem:[%s213_s29 + $0x10] sm:$0xff]  ;;  %v267_v3 = vadd.f32 %v265_v1, %v263_v0  ;;  %v266_v4 = vld [vmem:[%s213_s29 + $0x18] sm:$0xff]  ;;  %v284_v6 = vld [vmem:[%s222_s30] sm:$0xff]  ;;  %529 = vmatprep.subr.mxu0 %v751_v7  ;;  %531 = vmatprep.mubr.msk.f32.mxu0 %vm752_vm0, %v751_v7  ;;  %vm306_vm2 = vcmask 64512   ;;  %p254_p8 = scmp.lt.s32.totalorder %s737_s15, 1  ;;  %s519_s4 = sshll.u32 %s882_s28, 1 }
  0x41   : > { %v268_v5 = vadd.f32 %v266_v4, %v264_v2  ;;  %530 = vmatpush3.msra.mxu0 %v284_v6  ;;  %v295_v9 = vand.u32 127, %v294_v8  ;;  %v297_v10 = vshrl.u32 %v294_v8, 7  ;;  %s523_s18 = sshll.u32 %s737_s15, 5  ;;  %s252_s19 = scalar_lea.vmem [#allocation8], %s519_s4 }
  0x42   : > { %280 = vadd.xlane.f32.xlu0 %v267_v3  ;;  %s255_s24 = scalar_select %p254_p8, %s737_s15, 1 }
  0x43   : > { %v298_v12 = vsub.s32 %v295_v9, %v297_v10  ;;  %s394_s21 = sshll.u32 %s252_s19, 4  ;;  %s906_s10 = scalar_lea.hbm %s951_s3, %s523_s18  ;;  %s395_s21 = int_to_ptr.vmem [resolvable:$true] %s394_s21 }
  0x44   : > { %s256_s11 = scalar_lea.vmem %s950_s2, %s255_s24  ;;  %s381_s22 = scalar_lea.sflag [#allocation5], %s882_s28 }
  0x45   : > { %v520_v17 = vld [vmem:[%s256_s11] ss:$0 sm:$0xff]  ;;  %s661_s23 = scalar_lea.vmem %s395_s21, 32  ;;  %s753_s29 = smov [#allocation8]  }
  0x46   : > { %282 = vadd.xlane.f32.xlu0 %v268_v5  ;;  %p662_p0 = scmp.ne.s32.totalorder %s395_s21, %s661_s23  ;;  %s665_s15 = sshll.u32 %s753_s29, 4  ;;  %s666_s15 = int_to_ptr.vmem [resolvable:$false] %s665_s15 }
  0x47   : > { %s667_s0 = scalar_lea.vmem %s666_s15, 64  ;;  %p668_p6 = scmp.lt.s32.totalorder %s395_s21, %s666_s15 }
  0x48   : > { %p663_p2 = pnand %p662_p0, %p825_p9  ;;  %p669_p4 = scmp.lt.s32.totalorder %s667_s0, %s661_s23 }
  0x4a   : > { %p664_p5 = pneg %p663_p2  ;;  %p670_p7 = por %p669_p4, %p668_p6 }
  0x4c   : > { %p671_p1 = pnand %p670_p7, %p664_p5 }
  0xcb   : > { %v281_v11 = vpop.xlane.xlu0 %280 }
  0xcc   : > { %v299_v14 = vrot.slane %v281_v11, %v298_v12 }
  0xcf   : > { %v283_v13 = vpop.xlane.xlu0 %282 }
  0xd0   : > { %v303_v15 = vrot.slane %v283_v13, %v298_v12 }
  0xd2   : > { %v305_v16 = vsel %vm304_vm1, %v303_v15, %v299_v14 }
  0xd3   : > { %532 = vmatmul.mubr.msk.f32.vlgmr.msra.gmra.mxu0 %vm306_vm2, %v305_v16 }
 0x193   : > { %v375_v18 = vpop.f32.mrf.mxu0 }
 0x194   : > { %v376_v19 = vadd.f32 %v520_v17, %v375_v18 }
 0x195   : > { %v533_v20 = vpop.f32.mrf.mxu0 }
 0x196   : > { %379 = vst [vmem:[%s252_s19] sm:$0x3] %v376_v19 }
 0x197   : > { %674 = shalt.err (!%p671_p1)
}
 0x198   : > { %s675_s9 = scalar_lea.hbm %s906_s10, 32  ;;  %s679_s24 = scalar_lea.hbm %s951_s3, 64 }
 0x199   : > { %p676_p10 = scmp.ne.s32.totalorder %s906_s10, %s675_s9  ;;  %p680_p8 = scmp.lt.s32.totalorder %s906_s10, %s951_s3 }
 0x19a   : > { %p681_p0 = scmp.lt.s32.totalorder %s679_s24, %s675_s9 }
 0x19b   : > { %p677_p13 = pnand %p676_p10, %p825_p9 }
 0x19c   : > { %p682_p2 = por %p681_p0, %p680_p8 }
 0x19d   : > { %p678_p3 = pneg %p677_p13 }
 0x19f   : > { %p683_p5 = pnand %p682_p2, %p678_p3 }
 0x1a1   : > { %686 = shalt.err (!%p683_p5)
}
 0x1a2   : > { %538 = dma.vmem_to_hbm [thread:$0]  (%p825_p9), %s395_s21, 32, %s906_s10, %s381_s22  }
 0x1a3 PF: > { %s406_s7 = sand.u32 1, %s725_s12   ;;  %p548_p6 = pnand %p510_p12, %p832_p11 }
 0x1a4   : > { %s407_s11 = scalar_lea.sflag [#allocation5], %s406_s7 }
 0x1a5   : > { %p549_p4 = pneg %p548_p6 }
 0x1a7   : > { %720 = dma.done.wait (%p549_p4), %s407_s11, 32  }
 0x1a8   : > { %722 = vsyncadd (%p549_p4), %s407_s11, 4294967264  ;;  %s22_s17 = sadd.s32 1, %s745_s17   ;;  %s960_s12 = smov %s729_s13 }
 0x1a9   : > { %p19_p7 = scmp.ge.s32.totalorder %s22_s17, 4   ;;  %s961_s13 = smov %s733_s14 }
 0x1aa   : > { %s962_s14 = smov %s830_s26  ;;  %s963_s15 = smov %s741_s16 }
 0x1ab   : > { %s964_s16 = smov %s966_s20  ;;  %21 = sbr.rel (!%p19_p7) target bundleno = 10 (0xa), region = 101 }
 0x1b0   :  { %412 = vsyncpa [#allocation4], 1 }
 0x1b1   :  { %414 = vsyncpa [#allocation4 + $0x1], 1 }
 0x1b2   :  { %415 = vsyncpa [#allocation7], 1 }
 0x1b3   :  { %417 = vsyncpa [#allocation7 + $0x1], 1 }
 0x1b4   :  { %418 = vsyncpa [#allocation5], 1 }
 0x1b5   :  { %420 = vsyncpa [#allocation5 + $0x1], 1 }

</bundles_post_ra>
